<compile_context>
chip_gen: v7x
topology: tpu7x:2x2x1
jax: 0.10.0
libtpu: 0.0.40
codegen_flags: <defaults>
</compile_context>

<pallas_src>
import numpy as np
import jax
import jax.numpy as jnp
from jax import lax
from jax.experimental import pallas as pl
from jax.experimental.pallas import tpu as pltpu

NEG = np.float32(-3.0e38)        # "minus infinity" sentinel for masked prototype columns
LANE = 128                       # TPU lane width
STRIP = 16                       # sublane strip (1 bf16 vreg / 2 f32 vregs per slice)
TARGET_CHUNK_BYTES = 2 << 20     # ~2 MiB per input block (x2 double-buffer: well under
                                 # every generation's scoped-VMEM default)
MIN_SPLIT_BYTES = 512 << 10      # v7x: prefer >=2 parallel chunks of at least this size


def _round_up(x: int, m: int) -> int:
    return -(-x // m) * m


def _choose_chunk_rows(rows_needed: int, L: int, itemsize: int) -> int:
    """Rows (of 128 lane positions) per grid step: MiB-scale, STRIP-aligned, and
    split into >=2 chunks when there is enough data (v7x megacore sharding)."""
    bytes_per_row = L * LANE * itemsize
    chunk = max(STRIP, _round_up(max(1, TARGET_CHUNK_BYTES // bytes_per_row), STRIP))
    min_split_rows = max(STRIP, _round_up(max(1, MIN_SPLIT_BYTES // bytes_per_row), STRIP))
    if rows_needed >= 2 * min_split_rows:
        chunk = min(chunk, _round_up(-(-rows_needed // 2), STRIP))
    return min(chunk, _round_up(rows_needed, STRIP))


def pack_positions(seg_w_sgl: np.ndarray, itemsize: int = 4):
    """(S, G, L) mask-folded f32 segments -> lane-dense (L, R_pad, 128) f32.

    Every (segment, group) pair becomes one lane position; padding positions are 0
    across all L (their max is 0 => they contribute nothing to the sum).
    Returns (packed, rows_per_chunk, n_true_positions)."""
    S, G, L = seg_w_sgl.shape
    n_pos = S * G
    rows_needed = _round_up(max(n_pos, 1), LANE) // LANE
    rows_per_chunk = _choose_chunk_rows(rows_needed, L, itemsize)
    r_pad = _round_up(rows_needed, rows_per_chunk)          # chunking always divides
    w = np.zeros((L, r_pad * LANE), np.float32)
    w[:, :n_pos] = np.transpose(seg_w_sgl.astype(np.float32), (2, 0, 1)).reshape(L, n_pos)
    return w.reshape(L, r_pad, LANE), rows_per_chunk, n_pos


def scale_max_pallas(w_packed: jax.Array, rows_per_chunk: int,
                     num_groups: int, num_segments: int) -> jax.Array:
    """w_packed: (L, R, 128), mask folded in, padded positions zeroed (f32 or bf16).

    Returns -mean_over_segments(mean_over_groups(max_over_prototypes(w)))."""
    L, R, lane = w_packed.shape
    assert lane == LANE and R % rows_per_chunk == 0 and rows_per_chunk % STRIP == 0
    num_chunks = R // rows_per_chunk
    n_strips = rows_per_chunk // STRIP

    def kernel(w_ref, o_ref):
        # Stream (STRIP, 128) strips: L-way elementwise max straight from ref slices,
        # upcast once per strip, accumulate in f32.  Live set stays ~L+2 vregs.
        def strip_body(j, acc):
            base = pl.multiple_of(j * STRIP, STRIP)
            m = w_ref[0, pl.ds(base, STRIP), :]
            for l in range(1, L):                       # L is tiny & static
                m = jnp.maximum(m, w_ref[l, pl.ds(base, STRIP), :])
            return acc + m.astype(jnp.float32)

        acc0 = jnp.zeros((STRIP, LANE), jnp.float32)
        acc = lax.fori_loop(0, n_strips, strip_body, acc0,
                            unroll=True if n_strips <= 16 else 8)
        o_ref[0] = acc                                  # dense (16, 128) unmasked store

    partials = pl.pallas_call(
        kernel,
        out_shape=jax.ShapeDtypeStruct((num_chunks, STRIP, LANE), jnp.float32),
        grid_spec=pltpu.PrefetchScalarGridSpec(
            num_scalar_prefetch=0,
            grid=(num_chunks,),
            in_specs=[pl.BlockSpec((L, rows_per_chunk, LANE), lambda c: (0, c, 0))],
            out_specs=pl.BlockSpec((1, STRIP, LANE), lambda c: (c, 0, 0)),
        ),
        # independent per-chunk outputs -> megacore sharding on v7x; harmless elsewhere
        compiler_params=pltpu.CompilerParams(dimension_semantics=("parallel",)),
    )(w_packed)

    # epilogue: sum of per-(segment, group) maxima / (G * S), negated.
    return -jnp.sum(partials) * np.float32(1.0 / (num_groups * num_segments))


if __name__ == "__main__":
    # ---- Synthetic, deterministic ppnet structure -------------------------------------
    num_classes = 4
    num_scales = 2
    num_groups = 3
    num_projections = 2
    # scale 0: prototypes [0, 8) -> 2 per class ; scale 1: prototypes [8, 12) -> 1 per class
    scale_num_prototypes = {0: (0, 8), 1: (8, 12)}
    num_prototypes = 12
    in_features = 3  # per-class prototype count across scales (2 + 1)

    prototype_class_identity = np.zeros((num_prototypes, num_classes), np.float32)
    for c in range(num_classes):
        prototype_class_identity[2 * c, c] = 1.0
        prototype_class_identity[2 * c + 1, c] = 1.0      # scale-0 prototypes
        prototype_class_identity[8 + c, c] = 1.0          # scale-1 prototype

    group_class_identity = np.zeros((num_projections * num_groups, num_classes), np.float32)
    group_class_identity[0:3, 0] = 1.0
    group_class_identity[0:3, 1] = 1.0
    group_class_identity[3:6, 2] = 1.0
    group_class_identity[3:6, 3] = 1.0

    key = jax.random.PRNGKey(0)
    group_projection_weights = jax.random.normal(
        key, (num_projections, num_groups, in_features), dtype=jnp.float32
    )
    gpw_np = np.asarray(group_projection_weights)

    # ---- Host-side glue: replicate the torch loop's segment extraction ----------------
    # TODO(synk): the argmax/nonzero/.item() control flow is data-dependent host glue in
    # the original module and is kept in Python (not translated to Pallas).
    Lmax = 2  # max prototypes for a (class, scale) segment
    seg_w_list, ref_vals = [], []
    for cls_i in range(num_classes):
        if prototype_class_identity[:, cls_i].sum() == 0:
            continue
        id_proj = int(group_class_identity[:, cls_i].argmax()) // num_groups
        matrix_weight = gpw_np[id_proj]                    # (G, in_features)
        prev_scale = 0
        for scale in range(num_scales):
            lo, hi = scale_num_prototypes[scale]
            cls_proto_scale = np.nonzero(prototype_class_identity[lo:hi, cls_i])[0]
            if len(cls_proto_scale) == 0:
                continue                                   # keeps the NEG sentinel safe
            n = len(cls_proto_scale)
            sl = matrix_weight[:, prev_scale:prev_scale + n]   # (G, n)
            padded = np.full((num_groups, Lmax), NEG, np.float32)  # mask folded in
            padded[:, :n] = sl
            seg_w_list.append(padded)
            ref_vals.append(sl.max(axis=1).mean())
            prev_scale += n

    assert len(seg_w_list) >= 1, "ScaleMax needs at least one (class, scale) segment"
    seg_w = np.stack(seg_w_list)                     # (S=8, G=3, L=2), mask folded
    S = seg_w.shape[0]
    ref_f32 = np.float32(-np.mean(np.asarray(ref_vals, np.float32)))

    # ---- f32 path: matches the torch reference tightly --------------------------------
    w32, chunk32, _ = pack_positions(seg_w, itemsize=4)   # (L, 16, 128)
    out32 = jax.block_until_ready(
        scale_max_pallas(jnp.asarray(w32), chunk32, num_groups, S))
    assert np.allclose(np.asarray(out32), ref_f32, atol=1e-5, rtol=1e-5), (out32, ref_f32)

    # ---- bf16 path: halves HBM bytes on v6e/v7x (partials still accumulate in f32) ----
    w16np, chunk16, _ = pack_positions(seg_w, itemsize=2)
    w16 = jnp.asarray(w16np).astype(jnp.bfloat16)
    out16 = jax.block_until_ready(
        scale_max_pallas(w16, chunk16, num_groups, S))
    ref_bf = np.float32(
        -(np.asarray(w16.astype(jnp.float32)).max(axis=0).sum() / (num_groups * S)))
    assert np.allclose(np.asarray(out16), ref_bf, atol=1e-4, rtol=1e-4), (out16, ref_bf)

    print("KERNEL_OK")
</pallas_src>

<mosaic_0001>
module attributes {stable_mosaic.version = 11 : i64} {
  func.func @kernel(%arg0: i32, %arg1: memref<2x16x128xf32, #tpu.memory_space<vmem>>, %arg2: memref<1x16x128xf32, #tpu.memory_space<vmem>>) attributes {dimension_semantics = [#tpu.dimension_semantics<parallel>], iteration_bounds = array<i64: 1>, scalar_prefetch = 0 : i64, scratch_operands = 0 : i64, tpu.core_type = #tpu.core_type<tc>, window_params = [{transform_indices = @transform_0, window_bounds = array<i64: 2, 16, 128>}, {transform_indices = @transform_1, window_bounds = array<i64: 1, 16, 128>}]} {
    %cst = arith.constant 0.000000e+00 : f32
    %0 = vector.broadcast %cst : f32 to vector<16x128xf32>
    %c0_i32 = arith.constant 0 : i32
    %c16_i32 = arith.constant 16 : i32
    %1 = arith.muli %c0_i32, %c16_i32 : i32
    %2 = tpu.assume_multiple %1, 16 : i32
    %c0 = arith.constant 0 : index
    %3 = arith.index_cast %2 : i32 to index
    %c0_0 = arith.constant 0 : index
    %4 = vector.load %arg1[%c0, %3, %c0_0] : memref<2x16x128xf32, #tpu.memory_space<vmem>>, vector<1x16x128xf32>
    %5 = vector.shape_cast %4 : vector<1x16x128xf32> to vector<16x128xf32>
    %c1 = arith.constant 1 : index
    %6 = arith.index_cast %2 : i32 to index
    %c0_1 = arith.constant 0 : index
    %7 = vector.load %arg1[%c1, %6, %c0_1] : memref<2x16x128xf32, #tpu.memory_space<vmem>>, vector<1x16x128xf32>
    %8 = vector.shape_cast %7 : vector<1x16x128xf32> to vector<16x128xf32>
    %9 = arith.maximumf %5, %8 : vector<16x128xf32>
    %10 = arith.addf %0, %9 : vector<16x128xf32>
    %c1_i32 = arith.constant 1 : i32
    %c0_2 = arith.constant 0 : index
    %c0_3 = arith.constant 0 : index
    %c0_4 = arith.constant 0 : index
    %11 = vector.load %arg2[%c0_2, %c0_3, %c0_4] : memref<1x16x128xf32, #tpu.memory_space<vmem>>, vector<1x16x128xf32>
    %12 = vector.shape_cast %11 : vector<1x16x128xf32> to vector<16x128xf32>
    %13 = vector.shape_cast %10 : vector<16x128xf32> to vector<1x16x128xf32>
    tpu.vector_store %arg2[%c0_2, %c0_3, %c0_4], %13 {strides = array<i32>} : memref<1x16x128xf32, #tpu.memory_space<vmem>>, vector<1x16x128xf32>,
    return
  }
  func.func @transform_0(%arg0: i32) -> (i32, i32, i32) {
    %c0_i32 = arith.constant 0 : i32
    %c0_i32_0 = arith.constant 0 : i32
    %c0_i32_1 = arith.constant 0 : i32
    return %c0_i32, %arg0, %c0_i32_0 : i32, i32, i32
  }
  func.func @transform_1(%arg0: i32) -> (i32, i32, i32) {
    %c0_i32 = arith.constant 0 : i32
    %c0_i32_0 = arith.constant 0 : i32
    %c0_i32_1 = arith.constant 0 : i32
    return %arg0, %c0_i32, %c0_i32_0 : i32, i32, i32
  }
}

</mosaic_0001>

<bundles_post_ra>
// kernel: tpu_custom_call.1
= control target key start
LH: loop header
LB: loop body
LE: loop exit
PB: predicated region body
PF: predicated region fallthrough
CT: control target
= control target key end

     0   :  { %6 = vsyncpa [#allocation3], 0  ;;  %s149_s0 = inlined_call_operand.hbm [shape: f32[2,16,128], index: 0, kind: input, shape index: {}]   ;;  %s150_s1 = inlined_call_operand.hbm [shape: f32[1,16,128], index: 1, kind: output, shape index: {}]  }
   0x1   :  { %7 = vsyncpa [#allocation4], 0  ;;  %s105_s6 = smov [#allocation2]   ;;  %s57_s10 = scalar_lea.hbm %s149_s0, 512 }
   0x2   :  { %s13_s7 = sshll.u32 %s105_s6, 4  ;;  %p58_p0 = scmp.ne.s32.totalorder %s149_s0, %s57_s10  ;;  %s14_s7 = int_to_ptr.vmem [resolvable:$true] %s13_s7 }
   0x3   :  { %p61_p1 = scmp.lt.u32.totalorder %s57_s10, %s149_s0 }
   0x5   :  { %p63_p2 = pnand %p61_p1, %p58_p0 }
   0x7   :  { %66 = shalt.err (!%p63_p2)
}
   0x8   :  { %s67_s15 = scalar_lea.vmem %s14_s7, 512  ;;  %p72_p4 = scmp.lt.s32.totalorder %s14_s7, %s14_s7 }
   0x9   :  { %p68_p3 = scmp.ne.s32.totalorder %s14_s7, %s67_s15  ;;  %p73_p5 = scmp.lt.s32.totalorder %s67_s15, %s67_s15 }
   0xb   :  { %p74_p6 = por %p73_p5, %p72_p4 }
   0xd   :  { %p75_p7 = pnand %p74_p6, %p68_p3 }
   0xf   :  { %78 = shalt.err (!%p75_p7)
}
  0x10   :  { %s106_s16 = smov 128   ;;  %s107_s17 = smov 8  }
  0x11   :  { %19 = dma.hbm_to_vmem [thread:$0]  %s149_s0, 512, %s14_s7, [#allocation3], %s106_s16, %s106_s16, %s107_s17  }
  0x12   :  { %101 = dma.done.wait [#allocation3], 512  }
  0x13   :  { %102 = vsyncadd [#allocation3], 4294966784  ;;  %s108_s20 = smov [#allocation5]   ;;  %v23_v0 = vld [vmem:[#allocation2] sm:$0xff]  ;;  %v27_v1 = vld [vmem:[#allocation2 + $0x10] sm:$0xff] }
  0x14   :  { %s40_s21 = sshll.u32 %s108_s20, 4  ;;  %v24_v2 = vld [vmem:[#allocation2 + $0x8] sm:$0xff]  ;;  %v29_v3 = vmax.f32 %v23_v0, %v27_v1  ;;  %v28_v4 = vld [vmem:[#allocation2 + $0x18] sm:$0xff]  ;;  %s41_s21 = int_to_ptr.vmem [resolvable:$true] %s40_s21 }
  0x15   :  { %v30_v5 = vmax.f32 %v24_v2, %v28_v4  ;;  %s79_s22 = scalar_lea.vmem %s41_s21, 256  ;;  %p84_p9 = scmp.lt.s32.totalorder %s41_s21, %s41_s21 }
  0x16   :  { %33 = vst [vmem:[#allocation5] sm:$0xff] %v29_v3  ;;  %p80_p8 = scmp.ne.s32.totalorder %s41_s21, %s79_s22  ;;  %p85_p10 = scmp.lt.s32.totalorder %s79_s22, %s79_s22 }
  0x17   :  { %34 = vst [vmem:[#allocation5 + $0x8] sm:$0xff] %v30_v5 }
  0x18   :  { %p86_p11 = por %p85_p10, %p84_p9 }
  0x1a   :  { %p87_p12 = pnand %p86_p11, %p80_p8 }
  0x1c   :  { %90 = shalt.err (!%p87_p12)
}
  0x1d   :  { %s91_s24 = scalar_lea.hbm %s150_s1, 256 }
  0x1e   :  { %p92_p13 = scmp.ne.s32.totalorder %s150_s1, %s91_s24  ;;  %p95_p0 = scmp.lt.u32.totalorder %s91_s24, %s150_s1 }
  0x20   :  { %p97_p1 = pnand %p95_p0, %p92_p13 }
  0x22   :  { %100 = shalt.err (!%p97_p1)
}
  0x23   :  { %46 = dma.vmem_to_hbm [thread:$0]  %s41_s21, 256, %s150_s1, [#allocation4], %s106_s16, %s106_s16, %s107_s17  }
  0x24   :  { %103 = dma.done.wait [#allocation4], 256  }
  0x25   :  { %104 = vsyncadd [#allocation4], 4294967040 }
  0x26   :  { %50 = vsyncpa [#allocation3], 1 }
  0x27   :  { %51 = vsyncpa [#allocation4], 1 }

</bundles_post_ra>
